<compile_context>
chip_gen: v7x
topology: tpu7x:2x2x1
jax: 0.10.0
libtpu: 0.0.40
codegen_flags: <defaults>
</compile_context>

<pallas_src>
import functools

import jax
import jax.numpy as jnp
from jax.experimental import pallas as pl
from jax.experimental.pallas import tpu as pltpu

_LANE = 128
_MAX_SUB = 512                  # hard cap: 512 sublanes * 128 lanes = 64K px / step


def _cdiv(a, b):
    return -(-a // b)


def _round_up(a, b):
    return _cdiv(a, b) * b


def _vmem_capacity_bytes():
    """Physical VMEM of the local TPU; conservative (v7x) fallback if unknown."""
    cap = 64 * 1024 * 1024
    try:
        info = pltpu.get_tpu_info()
        cap = int(getattr(info, "vmem_capacity_bytes", cap) or cap)
    except Exception:
        pass
    return min(max(cap, 32 * 1024 * 1024), 128 * 1024 * 1024)


def _bytes_per_sublane(n_classes, x_itemsize, t_itemsize):
    """Per-(128-pixel row) VMEM cost: double-buffered inputs + f32 temporaries."""
    return (2 * n_classes * _LANE * x_itemsize      # logits block, double buffered
            + 2 * _LANE * t_itemsize                # target block, double buffered
            + 8 * _LANE * 4)                        # in-kernel f32 planes


def _choose_tiling(ns_total, max_sub, batch):
    """Pick (ns_tile, num_tiles).  Prefers exact tilings (zero padding) and keeps
    >= 2 grid steps when batch == 1 so both v7x TensorCores get work."""
    max_sub = max(8, (max_sub // 8) * 8)
    if ns_total <= max_sub:
        if batch == 1 and ns_total >= 16:
            ns_tile = _round_up(_cdiv(ns_total, 2), 8)
            return ns_tile, _cdiv(ns_total, ns_tile)
        return ns_total, 1                           # block == full dim: no /8 rule
    # Largest multiple-of-8 divisor of ns_total -> no sublane padding at all.
    min_tile = max(8, max_sub // 8)
    d = max_sub
    while d >= min_tile:
        if ns_total % d == 0:
            return d, ns_total // d
        d -= 8
    # Fallback: balanced tiles with minimal (< num_tiles * 8 sublanes) padding.
    num_tiles = _cdiv(ns_total, max_sub)
    ns_tile = _round_up(_cdiv(ns_total, num_tiles), 8)
    return ns_tile, num_tiles


def _partial_reduce(per_pix, out_sub):
    """Reduce the sublane axis of a (ns, 128) plane to a lane-dense slab that can
    be written with full, unmasked vector stores."""
    ns = per_pix.shape[0]
    if out_sub == 8:
        red = jnp.sum(per_pix.reshape(ns // 8, 8, _LANE), axis=0)       # (8, 128)
    else:
        red = jnp.sum(per_pix, axis=0, keepdims=True)                   # (1, 128)
    return red[None, None]                                              # (1,1,s,128)


def _l1_softmax_kernel(x_ref, t_ref, o_ref, *, n_classes, out_sub):
    # x_ref: (1, C, ns, 128) logits (native dtype); t_ref: (1, ns, 128) int32
    # class ids; o_ref: (1, 1, out_sub, 128) f32 per-(tile, batch) partial sums.
    t = t_ref[0]                                          # (ns, 128) int32

    # Pass 1: running max over the class axis (pure VPU, no large temporaries).
    m = x_ref[0, 0].astype(jnp.float32)
    for c in range(1, n_classes):
        m = jnp.maximum(m, x_ref[0, c].astype(jnp.float32))

    # Pass 2: fused exp / denominator / target-probability accumulation.
    # Never materializes a (C, ns, 128) exp tensor nor class-iota planes.
    denom = jnp.zeros_like(m)
    e_t = jnp.zeros_like(m)
    for c in range(n_classes):
        ec = jnp.exp(x_ref[0, c].astype(jnp.float32) - m)
        denom = denom + ec
        e_t = jnp.where(t == c, ec, e_t)

    # sum_c |softmax(x)_c - onehot(t)_c| == 2 * (1 - p_target)   (exact divide)
    per_pix = 2.0 * (1.0 - e_t / denom)
    o_ref[...] = _partial_reduce(per_pix, out_sub)


def _l1_sigmoid_kernel(x_ref, t_ref, o_ref, *, out_sub):
    # n_classes == 1 branch: |sigmoid(x) - target| via a single EUP tanh.
    x = x_ref[0].astype(jnp.float32)                      # (ns, 128)
    t = t_ref[0].astype(jnp.float32)                      # (ns, 128)
    p = 0.5 * (jnp.tanh(0.5 * x) + 1.0)                   # == sigmoid(x)
    o_ref[...] = _partial_reduce(jnp.abs(p - t), out_sub)


def l1_loss(logits, target, n_classes, *, max_sublanes=None):
    """Pallas equivalent of L1Loss(n_classes).forward(logits, target).

    `max_sublanes` is an optional tuning/testing knob capping the pixel-tile
    height (sublanes per grid step)."""
    B = logits.shape[0]
    C = n_classes
    # Native dtype all the way to the DMA (pass bf16 logits for ~2x less HBM
    # traffic); the f32 upcast happens inside the kernel.
    x = logits.reshape(B, C, -1)                          # (B, C, N)
    N = x.shape[-1]

    if n_classes == 1:
        t = target.reshape(B, -1)
        t_itemsize = jnp.dtype(t.dtype).itemsize
    else:
        t = target.reshape(B, -1).astype(jnp.int32)
        t_itemsize = 4
    x_itemsize = jnp.dtype(x.dtype).itemsize

    # --- tiling: lane-dense pixel layout, VMEM-budgeted sublane tiles --------
    ns_total = _cdiv(N, _LANE)
    vmem_cap = _vmem_capacity_bytes()
    budget = vmem_cap * 5 // 16                           # ~20 MiB v7x, ~40 MiB v5e/v6e
    max_sub = budget // _bytes_per_sublane(C, x_itemsize, t_itemsize)
    max_sub = int(max(8, min(_MAX_SUB, (max_sub // 8) * 8)))
    if max_sublanes is not None:
        max_sub = max(8, (int(max_sublanes) // 8) * 8)
    ns_tile, num_tiles = _choose_tiling(ns_total, max_sub, B)
    ns_pad = ns_tile * num_tiles
    n_pad = ns_pad * _LANE
    pad_px = n_pad - N
    out_sub = 8 if ns_tile % 8 == 0 else 1

    # --- (rarely needed) zero-pad to the tile boundary; padded pixels are
    # removed analytically below, so kernels never mask on the hot path ------
    if pad_px:
        x = jnp.pad(x, ((0, 0), (0, 0), (0, pad_px)))
        t = jnp.pad(t, ((0, 0), (0, pad_px)))

    if n_classes == 1:
        x_in = x.reshape(B, ns_pad, _LANE)
        kernel = functools.partial(_l1_sigmoid_kernel, out_sub=out_sub)
        x_spec = pl.BlockSpec((1, ns_tile, _LANE), lambda n, b: (b, n, 0))
        total = B * N
        pad_sum = 0.5 * B * pad_px                        # |sigmoid(0) - 0| = 0.5
    else:
        x_in = x.reshape(B, C, ns_pad, _LANE)
        kernel = functools.partial(_l1_softmax_kernel, n_classes=C, out_sub=out_sub)
        x_spec = pl.BlockSpec((1, C, ns_tile, _LANE), lambda n, b: (b, 0, n, 0))
        total = B * C * N
        pad_sum = 2.0 * (1.0 - 1.0 / C) * B * pad_px      # zero logits, class-0 pad
    t_in = t.reshape(B, ns_pad, _LANE)
    t_spec = pl.BlockSpec((1, ns_tile, _LANE), lambda n, b: (b, n, 0))

    partials = pl.pallas_call(
        kernel,
        out_shape=jax.ShapeDtypeStruct((num_tiles, B, out_sub, _LANE), jnp.float32),
        grid_spec=pltpu.PrefetchScalarGridSpec(
            num_scalar_prefetch=0,
            grid=(num_tiles, B),                          # larger axis (tiles) first
            in_specs=[x_spec, t_spec],
            out_specs=pl.BlockSpec((1, 1, out_sub, _LANE),
                                   lambda n, b: (n, b, 0, 0)),
        ),
        compiler_params=pltpu.CompilerParams(
            dimension_semantics=("parallel", "parallel"),
            vmem_limit_bytes=int(vmem_cap // 2)),
    )(x_in, t_in)

    return (jnp.sum(partials) - pad_sum) / total


def _ref_loss(logits, target, n_classes):
    B = logits.shape[0]
    if n_classes == 1:
        p = jax.nn.sigmoid(logits).reshape(B, 1, -1)
        t = target.reshape(B, 1, -1).astype(jnp.float32)
    else:
        p = jax.nn.softmax(logits.astype(jnp.float32), axis=1).reshape(B, n_classes, -1)
        t = jax.nn.one_hot(target.reshape(B, -1), n_classes, axis=1)
    return jnp.mean(jnp.abs(p - t))


if __name__ == "__main__":
    key = jax.random.PRNGKey(0)
    k1, k2, k3, k4, k5, k6, k7, k8 = jax.random.split(key, 8)

    # 1) Multi-class branch (softmax + one-hot), NCHW like the PyTorch module.
    B, C, H, W = 2, 4, 16, 16
    logits = jax.random.normal(k1, (B, C, H, W), dtype=jnp.float32)
    target = jax.random.randint(k2, (B, 1, H, W), 0, C, dtype=jnp.int32)
    loss = l1_loss(logits, target, n_classes=C)
    jax.block_until_ready(loss)
    ref = _ref_loss(logits, target, C)
    assert jnp.allclose(loss, ref, rtol=1e-4, atol=1e-6), (loss, ref)

    # 2) Binary branch (sigmoid).
    logits1 = jax.random.normal(k3, (B, 1, H, W), dtype=jnp.float32)
    target1 = jax.random.bernoulli(k4, 0.5, (B, 1, H, W)).astype(jnp.float32)
    loss1 = l1_loss(logits1, target1, n_classes=1)
    jax.block_until_ready(loss1)
    ref1 = _ref_loss(logits1, target1, 1)
    assert jnp.allclose(loss1, ref1, rtol=1e-4, atol=1e-6), (loss1, ref1)

    # 3) Non-multiple-of-128 spatial size: exercises the zero-pad + analytic
    #    pad correction and the (8, 128) partial-sum path.
    C3, H3, W3 = 3, 30, 30
    logits3 = jax.random.normal(k5, (B, C3, H3, W3), dtype=jnp.float32)
    target3 = jax.random.randint(k6, (B, 1, H3, W3), 0, C3, dtype=jnp.int32)
    loss3 = l1_loss(logits3, target3, n_classes=C3)
    jax.block_until_ready(loss3)
    ref3 = _ref_loss(logits3, target3, C3)
    assert jnp.allclose(loss3, ref3, rtol=1e-4, atol=1e-6), (loss3, ref3)

    # 4) Multi-tile grid with an exact-divisor tiling (no padding), forced via
    #    the tuning knob so it is exercised at small shapes.
    C4, H4, W4 = 3, 64, 64
    logits4 = jax.random.normal(k7, (B, C4, H4, W4), dtype=jnp.float32)
    target4 = jax.random.randint(k8, (B, 1, H4, W4), 0, C4, dtype=jnp.int32)
    loss4 = l1_loss(logits4, target4, n_classes=C4, max_sublanes=16)
    jax.block_until_ready(loss4)
    ref4 = _ref_loss(logits4, target4, C4)
    assert jnp.allclose(loss4, ref4, rtol=1e-4, atol=1e-6), (loss4, ref4)

    # 5) Multi-tile grid on the fallback (padded) tiling path.
    C5, H5, W5 = 3, 48, 48
    logits5 = jax.random.normal(k7, (B, C5, H5, W5), dtype=jnp.float32)
    target5 = jax.random.randint(k8, (B, 1, H5, W5), 0, C5, dtype=jnp.int32)
    loss5 = l1_loss(logits5, target5, n_classes=C5, max_sublanes=16)
    jax.block_until_ready(loss5)
    ref5 = _ref_loss(logits5, target5, C5)
    assert jnp.allclose(loss5, ref5, rtol=1e-4, atol=1e-6), (loss5, ref5)

    print("KERNEL_OK")
</pallas_src>

<mosaic_0001>
module attributes {stable_mosaic.version = 11 : i64} {
  func.func @_l1_softmax_kernel(%arg0: i32, %arg1: i32, %arg2: memref<1x4x2x128xf32, #tpu.memory_space<vmem>>, %arg3: memref<1x2x128xi32, #tpu.memory_space<vmem>>, %arg4: memref<1x1x1x128xf32, #tpu.memory_space<vmem>>) attributes {dimension_semantics = [#tpu.dimension_semantics<parallel>, #tpu.dimension_semantics<parallel>], iteration_bounds = array<i64: 1, 2>, scalar_prefetch = 0 : i64, scratch_operands = 0 : i64, tpu.core_type = #tpu.core_type<tc>, window_params = [{transform_indices = @transform_0, window_bounds = array<i64: 1, 4, 2, 128>}, {transform_indices = @transform_1, window_bounds = array<i64: 1, 2, 128>}, {transform_indices = @transform_2, window_bounds = array<i64: 1, 1, 1, 128>}]} {
    %c0 = arith.constant 0 : index
    %c0_0 = arith.constant 0 : index
    %c0_1 = arith.constant 0 : index
    %0 = vector.load %arg3[%c0, %c0_0, %c0_1] : memref<1x2x128xi32, #tpu.memory_space<vmem>>, vector<1x2x128xi32>
    %1 = vector.shape_cast %0 : vector<1x2x128xi32> to vector<2x128xi32>
    %c0_2 = arith.constant 0 : index
    %c0_3 = arith.constant 0 : index
    %c0_4 = arith.constant 0 : index
    %c0_5 = arith.constant 0 : index
    %2 = vector.load %arg2[%c0_2, %c0_3, %c0_4, %c0_5] : memref<1x4x2x128xf32, #tpu.memory_space<vmem>>, vector<1x1x2x128xf32>
    %3 = vector.shape_cast %2 : vector<1x1x2x128xf32> to vector<2x128xf32>
    %c0_6 = arith.constant 0 : index
    %c1 = arith.constant 1 : index
    %c0_7 = arith.constant 0 : index
    %c0_8 = arith.constant 0 : index
    %4 = vector.load %arg2[%c0_6, %c1, %c0_7, %c0_8] : memref<1x4x2x128xf32, #tpu.memory_space<vmem>>, vector<1x1x2x128xf32>
    %5 = vector.shape_cast %4 : vector<1x1x2x128xf32> to vector<2x128xf32>
    %6 = arith.maximumf %3, %5 : vector<2x128xf32>
    %c0_9 = arith.constant 0 : index
    %c2 = arith.constant 2 : index
    %c0_10 = arith.constant 0 : index
    %c0_11 = arith.constant 0 : index
    %7 = vector.load %arg2[%c0_9, %c2, %c0_10, %c0_11] : memref<1x4x2x128xf32, #tpu.memory_space<vmem>>, vector<1x1x2x128xf32>
    %8 = vector.shape_cast %7 : vector<1x1x2x128xf32> to vector<2x128xf32>
    %9 = arith.maximumf %6, %8 : vector<2x128xf32>
    %c0_12 = arith.constant 0 : index
    %c3 = arith.constant 3 : index
    %c0_13 = arith.constant 0 : index
    %c0_14 = arith.constant 0 : index
    %10 = vector.load %arg2[%c0_12, %c3, %c0_13, %c0_14] : memref<1x4x2x128xf32, #tpu.memory_space<vmem>>, vector<1x1x2x128xf32>
    %11 = vector.shape_cast %10 : vector<1x1x2x128xf32> to vector<2x128xf32>
    %12 = arith.maximumf %9, %11 : vector<2x128xf32>
    %cst = arith.constant 0.000000e+00 : f32
    %13 = vector.broadcast %cst : f32 to vector<2x128xf32>
    %cst_15 = arith.constant 0.000000e+00 : f32
    %14 = vector.broadcast %cst_15 : f32 to vector<2x128xf32>
    %c0_16 = arith.constant 0 : index
    %c0_17 = arith.constant 0 : index
    %c0_18 = arith.constant 0 : index
    %c0_19 = arith.constant 0 : index
    %15 = vector.load %arg2[%c0_16, %c0_17, %c0_18, %c0_19] : memref<1x4x2x128xf32, #tpu.memory_space<vmem>>, vector<1x1x2x128xf32>
    %16 = vector.shape_cast %15 : vector<1x1x2x128xf32> to vector<2x128xf32>
    %17 = arith.subf %16, %12 : vector<2x128xf32>
    %18 = math.exp %17 : vector<2x128xf32>
    %19 = arith.addf %13, %18 : vector<2x128xf32>
    %c0_i32 = arith.constant 0 : i32
    %20 = vector.broadcast %c0_i32 : i32 to vector<2x128xi32>
    %21 = arith.cmpi eq, %1, %20 : vector<2x128xi32>
    %22 = arith.select %21, %18, %14 : vector<2x128xi1>, vector<2x128xf32>
    %c0_20 = arith.constant 0 : index
    %c1_21 = arith.constant 1 : index
    %c0_22 = arith.constant 0 : index
    %c0_23 = arith.constant 0 : index
    %23 = vector.load %arg2[%c0_20, %c1_21, %c0_22, %c0_23] : memref<1x4x2x128xf32, #tpu.memory_space<vmem>>, vector<1x1x2x128xf32>
    %24 = vector.shape_cast %23 : vector<1x1x2x128xf32> to vector<2x128xf32>
    %25 = arith.subf %24, %12 : vector<2x128xf32>
    %26 = math.exp %25 : vector<2x128xf32>
    %27 = arith.addf %19, %26 : vector<2x128xf32>
    %c1_i32 = arith.constant 1 : i32
    %28 = vector.broadcast %c1_i32 : i32 to vector<2x128xi32>
    %29 = arith.cmpi eq, %1, %28 : vector<2x128xi32>
    %30 = arith.select %29, %26, %22 : vector<2x128xi1>, vector<2x128xf32>
    %c0_24 = arith.constant 0 : index
    %c2_25 = arith.constant 2 : index
    %c0_26 = arith.constant 0 : index
    %c0_27 = arith.constant 0 : index
    %31 = vector.load %arg2[%c0_24, %c2_25, %c0_26, %c0_27] : memref<1x4x2x128xf32, #tpu.memory_space<vmem>>, vector<1x1x2x128xf32>
    %32 = vector.shape_cast %31 : vector<1x1x2x128xf32> to vector<2x128xf32>
    %33 = arith.subf %32, %12 : vector<2x128xf32>
    %34 = math.exp %33 : vector<2x128xf32>
    %35 = arith.addf %27, %34 : vector<2x128xf32>
    %c2_i32 = arith.constant 2 : i32
    %36 = vector.broadcast %c2_i32 : i32 to vector<2x128xi32>
    %37 = arith.cmpi eq, %1, %36 : vector<2x128xi32>
    %38 = arith.select %37, %34, %30 : vector<2x128xi1>, vector<2x128xf32>
    %c0_28 = arith.constant 0 : index
    %c3_29 = arith.constant 3 : index
    %c0_30 = arith.constant 0 : index
    %c0_31 = arith.constant 0 : index
    %39 = vector.load %arg2[%c0_28, %c3_29, %c0_30, %c0_31] : memref<1x4x2x128xf32, #tpu.memory_space<vmem>>, vector<1x1x2x128xf32>
    %40 = vector.shape_cast %39 : vector<1x1x2x128xf32> to vector<2x128xf32>
    %41 = arith.subf %40, %12 : vector<2x128xf32>
    %42 = math.exp %41 : vector<2x128xf32>
    %43 = arith.addf %35, %42 : vector<2x128xf32>
    %c3_i32 = arith.constant 3 : i32
    %44 = vector.broadcast %c3_i32 : i32 to vector<2x128xi32>
    %45 = arith.cmpi eq, %1, %44 : vector<2x128xi32>
    %46 = arith.select %45, %42, %38 : vector<2x128xi1>, vector<2x128xf32>
    %47 = arith.divf %46, %43 : vector<2x128xf32>
    %cst_32 = arith.constant 1.000000e+00 : f32
    %48 = vector.broadcast %cst_32 : f32 to vector<2x128xf32>
    %49 = arith.subf %48, %47 : vector<2x128xf32>
    %cst_33 = arith.constant 2.000000e+00 : f32
    %50 = vector.broadcast %cst_33 : f32 to vector<2x128xf32>
    %51 = arith.mulf %50, %49 : vector<2x128xf32>
    %cst_34 = arith.constant dense<0.000000e+00> : vector<128xf32>
    %52 = vector.multi_reduction <add>, %51, %cst_34 [0] : vector<2x128xf32> to vector<128xf32>
    %53 = vector.shape_cast %52 : vector<128xf32> to vector<1x128xf32>
    %54 = vector.shape_cast %53 : vector<1x128xf32> to vector<1x1x1x128xf32>
    %c0_35 = arith.constant 0 : index
    %c0_36 = arith.constant 0 : index
    %c0_37 = arith.constant 0 : index
    %c0_38 = arith.constant 0 : index
    %55 = vector.load %arg4[%c0_35, %c0_36, %c0_37, %c0_38] : memref<1x1x1x128xf32, #tpu.memory_space<vmem>>, vector<1x1x1x128xf32>
    tpu.vector_store %arg4[%c0_35, %c0_36, %c0_37, %c0_38], %54 {strides = array<i32>} : memref<1x1x1x128xf32, #tpu.memory_space<vmem>>, vector<1x1x1x128xf32>,
    return
  }
  func.func @transform_0(%arg0: i32, %arg1: i32) -> (i32, i32, i32, i32) {
    %c0_i32 = arith.constant 0 : i32
    %c0_i32_0 = arith.constant 0 : i32
    %c0_i32_1 = arith.constant 0 : i32
    return %arg1, %c0_i32, %arg0, %c0_i32_0 : i32, i32, i32, i32
  }
  func.func @transform_1(%arg0: i32, %arg1: i32) -> (i32, i32, i32) {
    %c0_i32 = arith.constant 0 : i32
    %c0_i32_0 = arith.constant 0 : i32
    return %arg1, %arg0, %c0_i32 : i32, i32, i32
  }
  func.func @transform_2(%arg0: i32, %arg1: i32) -> (i32, i32, i32, i32) {
    %c0_i32 = arith.constant 0 : i32
    %c0_i32_0 = arith.constant 0 : i32
    %c0_i32_1 = arith.constant 0 : i32
    return %arg0, %arg1, %c0_i32, %c0_i32_0 : i32, i32, i32, i32
  }
}

</mosaic_0001>

<bundles_post_ra>
// kernel: tpu_custom_call.1
= control target key start
LH: loop header
LB: loop body
LE: loop exit
PB: predicated region body
PF: predicated region fallthrough
CT: control target
= control target key end

     0   :  { %7 = vsyncpa [#allocation3], 0  ;;  %s865_s0 = inlined_call_operand.hbm [shape: f32[2,4,2,128], index: 0, kind: input, shape index: {}]   ;;  %s866_s1 = inlined_call_operand.hbm [shape: s32[2,2,128], index: 1, kind: input, shape index: {}]   ;;  %s867_s2 = inlined_call_operand.hbm [shape: f32[1,2,1,128], index: 2, kind: output, shape index: {}]  }
   0x1   :  { %9 = vsyncpa [#allocation3 + $0x1], 0 }
   0x2   :  { %10 = vsyncpa [#allocation6], 0 }
   0x3   :  { %12 = vsyncpa [#allocation6 + $0x1], 0 }
   0x4   :  { %13 = vsyncpa [#allocation4], 0 }
   0x5   :  { %15 = vsyncpa [#allocation4 + $0x1], 0  ;;  %s649_s9 = smov 0   ;;  %s651_s10 = smov 0  }
   0x6   :  { %s653_s11 = smov 0   ;;  %s655_s12 = smov 0  }
   0x7   :  { %s657_s13 = smov 0   ;;  %s659_s14 = smov 0  }
   0x8 LB: > { %s383_s15 = sadd.s32 4294967295, %s627_s14   ;;  %s384_s16 = sadd.s32 4294967294, %s627_s14   ;;  %s627_s14 = sphi %s659_s14, %s21_s14   ;;  %s623_s13 = sphi %s657_s13, %s886_s13   ;;  %s619_s12 = sphi %s655_s12, %s885_s12   ;;  %s615_s11 = sphi %s653_s11, %s884_s11   ;;  %s611_s10 = sphi %s651_s10, %s883_s10   ;;  %s607_s9 = sphi %s649_s9, %s882_s9  }
   0x9   : > { %s30_s17 = sadd.s32 1, %s623_s13  ;;  %s42_s18 = sadd.s32 1, %s615_s11 }
   0xa   : > { %p31_p0 = scmp.ge.s32.totalorder %s30_s17, 2  ;;  %p49_p1 = scmp.ne.s32.totalorder %s615_s11, %s611_s10 }
   0xb   : > { %p50_p2 = scmp.eq.s32.totalorder %s627_s14, 0  ;;  %p55_p3 = scmp.ne.s32.totalorder %s611_s10, %s607_s9 }
   0xc   : > { %s888_s17 = smov (%p31_p0, %s30_s17), 0  ;;  %p56_p5 = scmp.eq.s32.totalorder %s383_s15, 0 }
   0xd   : > { %p690_p4 = por %p50_p2, %p49_p1  ;;  %s37_s20 = ssub.s32 %s623_s13, %s888_s17 }
   0xe   : > { %p109_p6 = scmp.eq.s32.totalorder %s383_s15, 1  ;;  %p40_p7 = scmp.eq.s32.totalorder %s37_s20, 0 }
   0xf   : > { %p696_p8 = por %p56_p5, %p55_p3  ;;  %p115_p10 = scmp.eq.s32.totalorder %s384_s16, 1 }
  0x10   : > { %p700_p9 = por %p109_p6, %p49_p1  ;;  %p419_p13 = scmp.lt.s32.totalorder %s627_s14, 2 }
  0x11   : > { %s871_s21 = scalar_select %p696_p8, 1, 0 }
  0x12   : > { %s872_s22 = scalar_select %p700_p9, 1, 0 }
  0x13   : > { %s705_s23 = scalar_select %p40_p7, %s615_s11, %s42_s18  }
  0x14   : > { %p707_p11 = por %p115_p10, %p55_p3  ;;  %s714_s25 = sand.u32 1, %s615_s11  }
  0x15   : > { %s387_s26 = sshll.u32 %s714_s25, 3  ;;  %s401_s27 = sshll.u32 %s623_s13, 7 }
  0x16   : > { %s873_s24 = scalar_select %p707_p11, 1, 0 }
  0x17   : > { %s721_s30 = scalar_lea.hbm %s865_s0, %s401_s27  ;;  %s139_s3 = scalar_lea.vmem [#allocation2], %s387_s26 }
  0x18   : > { %s147_s4 = sshll.u32 %s139_s3, 4  ;;  %p727_p0 = pnand %p419_p13, %p690_p4  ;;  %s723_s4 = int_to_ptr.vmem [resolvable:$true] %s147_s4 }
  0x19   : > { %s136_s6 = scalar_lea.sflag [#allocation3], %s714_s25  ;;  %s481_s7 = scalar_lea.hbm %s721_s30, 128 }
  0x1a   : > { %p482_p2 = scmp.ne.s32.totalorder %s721_s30, %s481_s7  ;;  %p483_p3 = pneg %p727_p0 }
  0x1b   : > { %s486_s16 = scalar_lea.hbm %s865_s0, 256  ;;  %p487_p4 = scmp.lt.u32.totalorder %s721_s30, %s865_s0 }
  0x1c   : > { %p484_p5 = pnand %p483_p3, %p482_p2  ;;  %p488_p7 = scmp.lt.u32.totalorder %s486_s16, %s481_s7 }
  0x1d   : > { %p490_p13 = scmp.lt.u32.totalorder %s481_s7, %s721_s30 }
  0x1e   : > { %p485_p6 = pneg %p484_p5  ;;  %p489_p10 = por %p488_p7, %p487_p4 }
  0x20   : > { %p491_p12 = por %p490_p13, %p489_p10 }
  0x22   : > { %p492_p1 = pnand %p491_p12, %p485_p6 }
  0x24   : > { %495 = shalt.err (!%p492_p1)
}
  0x25   : > { %s496_s20 = scalar_lea.vmem %s723_s4, 128  ;;  %s629_s26 = smov [#allocation2]  }
  0x26   : > { %p497_p2 = scmp.ne.s32.totalorder %s723_s4, %s496_s20  ;;  %s501_s27 = sshll.u32 %s629_s26, 4  ;;  %s502_s27 = int_to_ptr.vmem [resolvable:$false] %s501_s27 }
  0x27   : > { %s503_s28 = scalar_lea.vmem %s502_s27, 256  ;;  %p504_p9 = scmp.lt.s32.totalorder %s723_s4, %s502_s27 }
  0x28   : > { %p499_p5 = pnand %p497_p2, %p483_p3  ;;  %p505_p4 = scmp.lt.s32.totalorder %s503_s28, %s496_s20 }
  0x2a   : > { %p500_p11 = pneg %p499_p5  ;;  %p506_p7 = por %p505_p4, %p504_p9 }
  0x2c   : > { %p507_p10 = pnand %p506_p7, %p500_p11 }
  0x2e   : > { %510 = shalt.err (!%p507_p10)
}
  0x2f   : > { %s630_s29 = smov 32   ;;  %s631_s3 = smov 2  }
  0x30   : > { %411 = dma.hbm_to_vmem [thread:$0]  (!%p727_p0), %s721_s30, 128, %s723_s4, %s136_s6, %s630_s29, %s630_s29, %s631_s3  }
  0x31   : > { %p174_p12 = scmp.lt.s32.totalorder %s627_s14, 3  ;;  %s390_s7 = sshll.u32 %s714_s25, 1 }
  0x32   : > { %s391_s8 = sshll.u32 %s623_s13, 5  ;;  %p875_p9 = scmp.ge.s32.totalorder %s627_s14, 1 }
  0x33   : > { %s772_s19 = scalar_lea.hbm %s866_s1, %s391_s8  ;;  %s161_s20 = scalar_lea.vmem [#allocation5], %s390_s7 }
  0x34   : > { %p765_p11 = pnand %p875_p9, %p174_p12  ;;  %s169_s26 = sshll.u32 %s161_s20, 4  ;;  %s170_s26 = int_to_ptr.vmem [resolvable:$true] %s169_s26 }
  0x35   : > { %s158_s30 = scalar_lea.sflag [#allocation6], %s714_s25  ;;  %s511_s4 = scalar_lea.hbm %s772_s19, 32 }
  0x36   : > { %s876_s15 = scalar_select %p765_p11, 1, 0 }
  0x37   : > { %p512_p1 = scmp.ne.s32.totalorder %s772_s19, %s511_s4  ;;  %s516_s28 = scalar_lea.hbm %s866_s1, 64 }
  0x38   : > { %p517_p2 = scmp.lt.u32.totalorder %s772_s19, %s866_s1  ;;  %p518_p5 = scmp.lt.u32.totalorder %s516_s28, %s511_s4 }
  0x39   : > { %p514_p6 = pnand %p512_p1, %p483_p3  ;;  %p520_p7 = scmp.lt.u32.totalorder %s511_s4, %s772_s19 }
  0x3a   : > { %p519_p4 = por %p518_p5, %p517_p2 }
  0x3b   : > { %p515_p13 = pneg %p514_p6 }
  0x3c   : > { %p521_p10 = por %p520_p7, %p519_p4 }
  0x3e   : > { %p522_p12 = pnand %p521_p10, %p515_p13 }
  0x40   : > { %525 = shalt.err (!%p522_p12)
}
  0x41   : > { %s526_s25 = scalar_lea.vmem %s170_s26, 32  ;;  %s632_s7 = smov [#allocation5]  }
  0x42   : > { %p527_p9 = scmp.ne.s32.totalorder %s170_s26, %s526_s25  ;;  %s531_s8 = sshll.u32 %s632_s7, 4  ;;  %s532_s8 = int_to_ptr.vmem [resolvable:$false] %s531_s8 }
  0x43   : > { %s533_s16 = scalar_lea.vmem %s532_s8, 64  ;;  %p534_p8 = scmp.lt.s32.totalorder %s170_s26, %s532_s8 }
  0x44   : > { %p529_p1 = pnand %p527_p9, %p483_p3  ;;  %p535_p11 = scmp.lt.s32.totalorder %s533_s16, %s526_s25 }
  0x46   : > { %p530_p6 = pneg %p529_p1  ;;  %p536_p2 = por %p535_p11, %p534_p8 }
  0x48   : > { %p537_p5 = pnand %p536_p2, %p530_p6 }
  0x4a   : > { %540 = shalt.err (!%p537_p5)
}
  0x4b   : > { %414 = dma.hbm_to_vmem [thread:$0]  (!%p727_p0), %s772_s19, 32, %s170_s26, %s158_s30  }
  0x4c   : > { %p877_p13 = scmp.ne.s32.totalorder %s876_s15, 0 }
  0x4d   : > { %s797_s18 = sand.u32 (!%p877_p13), 1, %s611_s10   ;;  %p878_p3 = scmp.ne.s32.totalorder (!%p877_p13), %s871_s21, 0 }
  0x4e   : > { %178 = sbr.rel (%p877_p13) target bundleno = 162 (0xa2), region = 28  ;;  %s393_s20 = sshll.u32 (!%p877_p13), %s797_s18, 3 }
  0x4f   : > { %s181_s4 = scalar_lea.sflag (!%p877_p13), [#allocation3], %s797_s18  ;;  %s184_s6 = scalar_lea.vmem (!%p877_p13), [#allocation2], %s393_s20 }
  0x55   : > { %594 = dma.done.wait (%p878_p3), %s181_s4, 128  }
  0x56   : > { %596 = vsyncadd (%p878_p3), %s181_s4, 4294967168  ;;  %s394_s5 = sshll.u32 %s797_s18, 1  ;;  %s190_s15 = scalar_lea.sflag [#allocation6], %s797_s18 }
  0x57   : > { %s193_s19 = scalar_lea.vmem [#allocation5], %s394_s5 }
  0x58   : > { %598 = dma.done.wait (%p878_p3), %s190_s15, 32  }
  0x59   : > { %600 = vsyncadd (%p878_p3), %s190_s15, 4294967264  ;;  %v219_v0 = vld [vmem:[%s184_s6] sm:$0x3]  ;;  %v395_v1 = vld [vmem:[%s184_s6 + $0x2] sm:$0x3]  ;;  %vm257_vm4 = vcmask 1041408  }
  0x5a   : > { %v222_v2 = vmax.f32 %v219_v0, %v395_v1  ;;  %v396_v3 = vld [vmem:[%s184_s6 + $0x4] sm:$0x3]  ;;  %v397_v4 = vld [vmem:[%s184_s6 + $0x6] sm:$0x3]  ;;  %v218_v17 = vld [vmem:[%s193_s19] sm:$0x3] }
  0x5b   : > { %vm233_vm0 = vcmp.eq.s32.totalorder %v218_v17, 0  ;;  %vm239_vm1 = vcmp.eq.s32.totalorder %v218_v17, 1  ;;  %vm245_vm2 = vcmp.eq.s32.totalorder %v218_v17, 2  ;;  %vm251_vm3 = vcmp.eq.s32.totalorder %v218_v17, 3  ;;  %s217_s21 = scalar_lea.vmem [#allocation7], %s797_s18  ;;  %s398_s30 = sshll.u32 %s619_s12, 4 }
  0x5c   : > { %v225_v5 = vmax.f32 %v222_v2, %v396_v3  ;;  %s281_s26 = sshll.u32 %s217_s21, 4  ;;  %s818_s29 = scalar_lea.hbm %s867_s2, %s398_s30  ;;  %s813_s26 = int_to_ptr.vmem [resolvable:$true] %s281_s26 }
  0x5d   : > { %s267_s3 = scalar_lea.sflag [#allocation4], %s797_s18  ;;  %s541_s25 = scalar_lea.vmem %s813_s26, 16 }
  0x5e   : > { %v228_v6 = vmax.f32 %v225_v5, %v397_v4  ;;  %p542_p8 = scmp.ne.s32.totalorder %s813_s26, %s541_s25  ;;  %p879_p0 = scmp.ne.s32.totalorder %s872_s22, 0 }
  0x5f   : > { %s633_s12 = smov [#allocation7]  }
  0x60   : > { %v229_v7 = vsub.f32 %v219_v0, %v228_v6  ;;  %v235_v8 = vsub.f32 %v395_v1, %v228_v6  ;;  %v241_v9 = vsub.f32 %v396_v3, %v228_v6  ;;  %v247_v10 = vsub.f32 %v397_v4, %v228_v6  ;;  %p543_p11 = pnand %p542_p8, %p879_p0  ;;  %s545_s7 = sshll.u32 %s633_s12, 4  ;;  %s546_s7 = int_to_ptr.vmem [resolvable:$false] %s545_s7 }
  0x61   : > { %s547_s8 = scalar_lea.vmem %s546_s7, 32  ;;  %p548_p7 = scmp.lt.s32.totalorder %s813_s26, %s546_s7 }
  0x62   : > { %v230_v11 = vmul.f32 1.442695, %v229_v7  ;;  %v236_v12 = vmul.f32 1.442695, %v235_v8  ;;  %v242_v13 = vmul.f32 1.442695, %v241_v9  ;;  %p544_p4 = pneg %p543_p11  ;;  %p549_p10 = scmp.lt.s32.totalorder %s547_s8, %s541_s25 }
  0x63   : > { %v248_v14 = vmul.f32 1.442695, %v247_v10 }
  0x64   : > { %471 = vpow2.f32 %v230_v11  ;;  %p550_p12 = por %p549_p10, %p548_p7 }
  0x65   : > { %473 = vpow2.f32 %v236_v12 }
  0x66   : > { %475 = vpow2.f32 %v242_v13  ;;  %p551_p9 = pnand %p550_p12, %p544_p4 }
  0x67   : > { %477 = vpow2.f32 %v248_v14 }
  0x6e   : > { %v472_v15 = vpop.eup %471 }
  0x6f   : > { %v474_v16 = vpop.eup %473  ;;  %v234_v23 = vsel %vm233_vm0, %v472_v15, 0.0 }
  0x70   : > { %v476_v18 = vpop.eup %475  ;;  %v238_v19 = vadd.f32 %v474_v16, %v472_v15  ;;  %v240_v24 = vsel %vm239_vm1, %v474_v16, %v234_v23 }
  0x71   : > { %v478_v20 = vpop.eup %477  ;;  %v246_v25 = vsel %vm245_vm2, %v476_v18, %v240_v24 }
  0x72   : > { %v244_v21 = vadd.f32 %v476_v18, %v238_v19  ;;  %v252_v26 = vsel %vm251_vm3, %v478_v20, %v246_v25 }
  0x74   : > { %v250_v22 = vadd.f32 %v478_v20, %v244_v21 }
  0x76   : > { %479 = vrcp.f32 %v250_v22 }
  0x80   : > { %v480_v27 = vpop.eup %479 }
  0x81   : > { %v254_v28 = vmul.f32 %v480_v27, %v252_v26 }
  0x83   : > { %v255_v29 = vsub.f32 1.0, %v254_v28 }
  0x85   : > { %v256_v30 = vmul.f32 2.0, %v255_v29 }
  0x87   : > { %v258_v31 = vsel %vm257_vm4, %v256_v30, 0.0 }
  0x88   : > { %v259_v32 = vrot.slane %v258_v31, 4 }
  0x8a   : > { %v260_v33 = vadd.f32 %v259_v32, %v258_v31 }
  0x8c   : > { %v261_v34 = vrot.slane %v260_v33, 2 }
  0x8e   : > { %v262_v35 = vadd.f32 %v261_v34, %v260_v33 }
  0x90   : > { %v263_v36 = vrot.slane %v262_v35, 1 }
  0x92   : > { %v264_v37 = vadd.f32 %v263_v36, %v262_v35 }
  0x94   : > { %265 = vst [vmem:[%s217_s21] sm:$0x1] %v264_v37 }
  0x95   : > { %554 = shalt.err (!%p551_p9)
}
  0x96   : > { %s555_s16 = scalar_lea.hbm %s818_s29, 16  ;;  %s559_s4 = scalar_lea.hbm %s867_s2, 32 }
  0x97   : > { %p556_p1 = scmp.ne.s32.totalorder %s818_s29, %s555_s16  ;;  %p560_p5 = scmp.lt.u32.totalorder %s818_s29, %s867_s2 }
  0x98   : > { %p561_p13 = scmp.lt.u32.totalorder %s559_s4, %s555_s16  ;;  %p563_p8 = scmp.lt.u32.totalorder %s555_s16, %s818_s29 }
  0x99   : > { %p557_p6 = pnand %p556_p1, %p879_p0 }
  0x9a   : > { %p562_p3 = por %p561_p13, %p560_p5 }
  0x9b   : > { %p558_p2 = pneg %p557_p6 }
  0x9c   : > { %p564_p11 = por %p563_p8, %p562_p3 }
  0x9e   : > { %p565_p4 = pnand %p564_p11, %p558_p2 }
  0xa0   : > { %568 = shalt.err (!%p565_p4)
}
  0xa1   : > { %406 = dma.vmem_to_hbm [thread:$0]  (%p879_p0), %s813_s26, 16, %s818_s29, %s267_s3  }
  0xa2 PF: > { %s293_s15 = sand.u32 1, %s607_s9   ;;  %p880_p7 = scmp.ne.s32.totalorder %s873_s24, 0 }
  0xa3   : > { %p881_p10 = scmp.ge.s32.totalorder %s627_s14, 2  ;;  %s294_s19 = scalar_lea.sflag [#allocation4], %s293_s15 }
  0xa5   : > { %p416_p12 = pnand %p881_p10, %p880_p7 }
  0xa7   : > { %602 = dma.done.wait (!%p416_p12), %s294_s19, 16  }
  0xa8   : > { %604 = vsyncadd (!%p416_p12), %s294_s19, 4294967280  ;;  %s21_s14 = sadd.s32 1, %s627_s14   ;;  %s882_s9 = smov %s611_s10 }
  0xa9   : > { %p18_p9 = scmp.ge.s32.totalorder %s21_s14, 4   ;;  %s883_s10 = smov %s615_s11 }
  0xaa   : > { %s884_s11 = smov %s705_s23  ;;  %s885_s12 = smov %s623_s13 }
  0xab   : > { %s886_s13 = smov %s888_s17  ;;  %20 = sbr.rel (!%p18_p9) target bundleno = 8 (0x8), region = 89 }
  0xb2   :  { %298 = vsyncpa [#allocation3], 1 }
  0xb3   :  { %300 = vsyncpa [#allocation3 + $0x1], 1 }
  0xb4   :  { %301 = vsyncpa [#allocation6], 1 }
  0xb5   :  { %303 = vsyncpa [#allocation6 + $0x1], 1 }
  0xb6   :  { %304 = vsyncpa [#allocation4], 1 }
  0xb7   :  { %306 = vsyncpa [#allocation4 + $0x1], 1 }

</bundles_post_ra>
